<compile_context>
chip_gen: v7x
topology: tpu7x:2x2x1
jax: 0.10.0
libtpu: 0.0.40
codegen_flags: <defaults>
</compile_context>

<pallas_src>
import functools

import jax
import jax.numpy as jnp
from jax.experimental import pallas as pl
from jax.experimental.pallas import tpu as pltpu


def readout_kernel(x_ref, wt_ref, b_ref, o_ref, acc_ref, *, inv_s):
    # x_ref : (TB, TS, D)  tile of the input
    # wt_ref: (D, M)       pre-transposed weight (grid-invariant)
    # b_ref : (1, M)       bias (grid-invariant)
    # o_ref : (TB, M)      output block (resident across the S axis)
    # acc_ref: (TB, D) f32 running sum of x over the sequence axis
    s_idx = pl.program_id(1)

    @pl.when(s_idx == 0)
    def _():
        acc_ref[...] = jnp.zeros_like(acc_ref)

    # Sequence reduction of this S-tile (VPU/XLU only, no MXU, no (S,M) temp).
    acc_ref[...] += jnp.sum(x_ref[...].astype(jnp.float32), axis=1)

    @pl.when(s_idx == pl.num_programs(1) - 1)
    def _():
        # mean over the *true* sequence length (TS divides S by construction).
        mean_x = acc_ref[...] * inv_s                                  # (TB, D)
        y = jnp.dot(mean_x, wt_ref[...].astype(jnp.float32),
                    preferred_element_type=jnp.float32)                # (TB, M)
        o_ref[...] = (y + b_ref[...].astype(jnp.float32)).astype(o_ref.dtype)


def _largest_divisor_tile(n, cap):
    """Largest t <= cap with n % t == 0 (keeps blocks exact, no padding)."""
    t = min(n, cap)
    while n % t != 0:
        t -= 1
    return t


def readout_forward(output_H, weight, bias, *, tb_cap=128, ts_cap=512):
    """output_H: (B, S, D); weight: (M, D) (nn.Linear); bias: (M,) -> (B, M)."""
    B, S, D = output_H.shape
    M = weight.shape[0]

    # One-time host/XLA-side layout prep (grid-invariant, free per call).
    wt = jnp.asarray(weight).T                 # (D, M): canonical MXU feed
    bias2d = jnp.asarray(bias).reshape(1, M)

    # Batch-block multiple rows per grid step (dense (TB, M) stores), and tile
    # the sequence axis so double-buffered input blocks stay small enough for
    # the default scoped VMEM on every TPU generation (v5e/v6e/v7x).
    TB = _largest_divisor_tile(B, tb_cap)
    TS = _largest_divisor_tile(S, ts_cap)

    kernel = functools.partial(readout_kernel, inv_s=1.0 / float(S))

    return pl.pallas_call(
        kernel,
        out_shape=jax.ShapeDtypeStruct((B, M), output_H.dtype),
        grid_spec=pltpu.PrefetchScalarGridSpec(
            num_scalar_prefetch=0,
            grid=(B // TB, S // TS),           # reduction (S) axis last
            in_specs=[
                pl.BlockSpec((TB, TS, D), lambda b, s: (b, s, 0)),  # x tile
                pl.BlockSpec((D, M), lambda b, s: (0, 0)),          # weight.T
                pl.BlockSpec((1, M), lambda b, s: (0, 0)),          # bias
            ],
            out_specs=pl.BlockSpec((TB, M), lambda b, s: (b, 0)),   # accumulator
            scratch_shapes=[pltpu.VMEM((TB, D), jnp.float32)],
        ),
        compiler_params=pltpu.CompilerParams(
            dimension_semantics=("parallel", "arbitrary")),
    )(output_H, wt, bias2d)


def reference_forward(output_H, weight, bias):
    y = jnp.einsum("bsd,md->bsm", output_H, weight) + bias
    return jnp.mean(y, axis=1)


if __name__ == "__main__":
    # Small shapes consistent with the module: (batch, seq, out_dim)
    B, S, out_dim, molvec_dim = 2, 8, 32, 16

    key = jax.random.PRNGKey(0)
    kx, kw, kb = jax.random.split(key, 3)

    output_H = jax.random.normal(kx, (B, S, out_dim), dtype=jnp.float32)

    # Deterministic param init matching nn.Linear(out_dim, molvec_dim):
    #   weight: (molvec_dim, out_dim), xavier_normal_ => std = sqrt(2/(fan_in+fan_out))
    xavier_std = (2.0 / (out_dim + molvec_dim)) ** 0.5
    weight = xavier_std * jax.random.normal(kw, (molvec_dim, out_dim), dtype=jnp.float32)
    #   bias: PyTorch default uniform(-1/sqrt(fan_in), 1/sqrt(fan_in))
    bound = 1.0 / (out_dim ** 0.5)
    bias = jax.random.uniform(kb, (molvec_dim,), minval=-bound, maxval=bound,
                              dtype=jnp.float32)

    out = readout_forward(output_H, weight, bias)
    out = jax.block_until_ready(out)

    ref = reference_forward(output_H, weight, bias)
    assert out.shape == (B, molvec_dim)
    assert jnp.allclose(out, ref, atol=1e-5, rtol=1e-5), "mismatch vs reference"

    print("KERNEL_OK")
</pallas_src>

<mosaic_0001>
module attributes {stable_mosaic.version = 11 : i64} {
  func.func @readout_kernel(%arg0: i32, %arg1: i32, %arg2: memref<2x8x32xf32, #tpu.memory_space<vmem>>, %arg3: memref<32x16xf32, #tpu.memory_space<vmem>>, %arg4: memref<1x16xf32, #tpu.memory_space<vmem>>, %arg5: memref<2x16xf32, #tpu.memory_space<vmem>>, %arg6: memref<2x32xf32, #tpu.memory_space<vmem>>) attributes {dimension_semantics = [#tpu.dimension_semantics<parallel>, #tpu.dimension_semantics<arbitrary>], iteration_bounds = array<i64: 1, 1>, scalar_prefetch = 0 : i64, scratch_operands = 1 : i64, tpu.core_type = #tpu.core_type<tc>, window_params = [{transform_indices = @transform_0, window_bounds = array<i64: 2, 8, 32>}, {pipeline_mode = #tpu.pipeline_mode<synchronous>, transform_indices = @transform_1, window_bounds = array<i64: 32, 16>}, {pipeline_mode = #tpu.pipeline_mode<synchronous>, transform_indices = @transform_2, window_bounds = array<i64: 1, 16>}, {transform_indices = @transform_3, window_bounds = array<i64: 2, 16>}]} {
    %c0_i32 = arith.constant 0 : i32
    %0 = arith.cmpi eq, %arg1, %c0_i32 : i32
    %1 = arith.extui %0 : i1 to i32
    %c0_i32_0 = arith.constant 0 : i32
    %2 = arith.cmpi ne, %1, %c0_i32_0 : i32
    scf.if %2 {
      %cst_9 = arith.constant 0.000000e+00 : f32
      %11 = vector.broadcast %cst_9 : f32 to vector<2x32xf32>
      %c0_10 = arith.constant 0 : index
      %c0_11 = arith.constant 0 : index
      %12 = vector.load %arg6[%c0_10, %c0_11] : memref<2x32xf32, #tpu.memory_space<vmem>>, vector<2x32xf32>
      tpu.vector_store %arg6[%c0_10, %c0_11], %11 {strides = array<i32>} : memref<2x32xf32, #tpu.memory_space<vmem>>, vector<2x32xf32>,
    } else {
    }
    %c0 = arith.constant 0 : index
    %c0_1 = arith.constant 0 : index
    %3 = vector.load %arg6[%c0, %c0_1] : memref<2x32xf32, #tpu.memory_space<vmem>>, vector<2x32xf32>
    %c0_2 = arith.constant 0 : index
    %c0_3 = arith.constant 0 : index
    %c0_4 = arith.constant 0 : index
    %4 = vector.load %arg2[%c0_2, %c0_3, %c0_4] : memref<2x8x32xf32, #tpu.memory_space<vmem>>, vector<2x8x32xf32>
    %cst = arith.constant dense<0.000000e+00> : vector<2x32xf32>
    %5 = vector.multi_reduction <add>, %4, %cst [1] : vector<2x8x32xf32> to vector<2x32xf32>
    %6 = arith.addf %3, %5 : vector<2x32xf32>
    %c0_5 = arith.constant 0 : index
    %c0_6 = arith.constant 0 : index
    %7 = vector.load %arg6[%c0_5, %c0_6] : memref<2x32xf32, #tpu.memory_space<vmem>>, vector<2x32xf32>
    tpu.vector_store %arg6[%c0_5, %c0_6], %6 {strides = array<i32>} : memref<2x32xf32, #tpu.memory_space<vmem>>, vector<2x32xf32>,
    %c0_i32_7 = arith.constant 0 : i32
    %8 = arith.cmpi eq, %arg1, %c0_i32_7 : i32
    %9 = arith.extui %8 : i1 to i32
    %c0_i32_8 = arith.constant 0 : i32
    %10 = arith.cmpi ne, %9, %c0_i32_8 : i32
    scf.if %10 {
      %c0_9 = arith.constant 0 : index
      %c0_10 = arith.constant 0 : index
      %11 = vector.load %arg6[%c0_9, %c0_10] : memref<2x32xf32, #tpu.memory_space<vmem>>, vector<2x32xf32>
      %cst_11 = arith.constant 1.250000e-01 : f32
      %12 = vector.broadcast %cst_11 : f32 to vector<2x32xf32>
      %13 = arith.mulf %11, %12 : vector<2x32xf32>
      %c0_12 = arith.constant 0 : index
      %c0_13 = arith.constant 0 : index
      %14 = vector.load %arg3[%c0_12, %c0_13] : memref<32x16xf32, #tpu.memory_space<vmem>>, vector<32x16xf32>
      %cst_14 = arith.constant dense<0.000000e+00> : vector<2x16xf32>
      %15 = tpu.matmul %13, %14, %cst_14 {dimension_numbers = #tpu.dot_dimension_numbers<[1], [0], [0], [1], [0, 0, 1, 1], [], []>} : vector<2x32xf32>, vector<32x16xf32>, vector<2x16xf32> -> vector<2x16xf32>
      %c0_15 = arith.constant 0 : index
      %c0_16 = arith.constant 0 : index
      %16 = vector.load %arg4[%c0_15, %c0_16] : memref<1x16xf32, #tpu.memory_space<vmem>>, vector<1x16xf32>
      %17 = vector.broadcast %16 : vector<1x16xf32> to vector<2x16xf32>
      %18 = arith.addf %15, %17 : vector<2x16xf32>
      %c0_17 = arith.constant 0 : index
      %c0_18 = arith.constant 0 : index
      %19 = vector.load %arg5[%c0_17, %c0_18] : memref<2x16xf32, #tpu.memory_space<vmem>>, vector<2x16xf32>
      tpu.vector_store %arg5[%c0_17, %c0_18], %18 {strides = array<i32>} : memref<2x16xf32, #tpu.memory_space<vmem>>, vector<2x16xf32>,
    } else {
    }
    return
  }
  func.func @transform_0(%arg0: i32, %arg1: i32) -> (i32, i32, i32) {
    %c0_i32 = arith.constant 0 : i32
    %c0_i32_0 = arith.constant 0 : i32
    return %arg0, %arg1, %c0_i32 : i32, i32, i32
  }
  func.func @transform_1(%arg0: i32, %arg1: i32) -> (i32, i32) {
    %c0_i32 = arith.constant 0 : i32
    %c0_i32_0 = arith.constant 0 : i32
    %c0_i32_1 = arith.constant 0 : i32
    return %c0_i32, %c0_i32_0 : i32, i32
  }
  func.func @transform_2(%arg0: i32, %arg1: i32) -> (i32, i32) {
    %c0_i32 = arith.constant 0 : i32
    %c0_i32_0 = arith.constant 0 : i32
    %c0_i32_1 = arith.constant 0 : i32
    return %c0_i32, %c0_i32_0 : i32, i32
  }
  func.func @transform_3(%arg0: i32, %arg1: i32) -> (i32, i32) {
    %c0_i32 = arith.constant 0 : i32
    %c0_i32_0 = arith.constant 0 : i32
    return %arg0, %c0_i32 : i32, i32
  }
}

</mosaic_0001>

<bundles_post_ra>
// kernel: tpu_custom_call.1
= control target key start
LH: loop header
LB: loop body
LE: loop exit
PB: predicated region body
PF: predicated region fallthrough
CT: control target
= control target key end

     0   :  { %vm19_vm0 = vcmask 254976   ;;  %v204_v3 = vmov 0.0|0.0   ;;  %v205_v6 = vmov 0.0   ;;  %vm24_vm1 = vcmask 261120   ;;  %s266_s0 = inlined_call_operand.vmem [shape: f32[2,8,32], index: 0, kind: input, shape index: {}]   ;;  %s267_s1 = inlined_call_operand.vmem [shape: f32[32,16], index: 1, kind: input, shape index: {}]   ;;  %s268_s2 = inlined_call_operand.vmem [shape: f32[1,16], index: 2, kind: input, shape index: {}]   ;;  %s269_s3 = inlined_call_operand.hbm [shape: f32[2,16], index: 3, kind: output, shape index: {}]  }
   0x1   :  { %v52_v0 = vld [vmem:[%s267_s1] sm:$0xff]  ;;  %v53_v1 = vld [vmem:[%s267_s1 + $0x8] sm:$0xff]  ;;  %v54_v2 = vld [vmem:[%s267_s1 + $0x10] sm:$0xff]  ;;  %170 = vmatprep.subr.bf16.mxu0 %v204_v3  ;;  %20 = vst.msk [vmem:[#allocation2] sm:$0x3] %vm19_vm0, %v205_v6  ;;  %vm206_vm2 = vmmov 0  }
   0x2   :  { %v171_v4 = vpack.c.bf16 %v53_v1, %v52_v0  ;;  %v55_v5 = vld [vmem:[%s267_s1 + $0x18] sm:$0xff]  ;;  %v22_v7 = vld [vmem:[%s266_s0] sm:$0xff]  ;;  %v23_v8 = vld [vmem:[%s266_s0 + $0x8] sm:$0xff]  ;;  %167 = vmatprep.mubr.msk.f32.mxu0 %vm206_vm2, %v205_v6 }
   0x3   :  { %v25_v9 = vsel %vm24_vm1, %v22_v7, 0.0  ;;  %v32_v10 = vsel %vm24_vm1, %v23_v8, 0.0 }
   0x4   :  { %8 = vsyncpa [#allocation4], 0  ;;  %172 = vmatpush3.bf16.msra.mxu0 %v171_v4  ;;  %v174_v11 = vpack.c.bf16 %v55_v5, %v54_v2  ;;  %v26_v12 = vrot.slane %v25_v9, 4  ;;  %v33_v13 = vrot.slane %v32_v10, 4  ;;  %vm41_vm3 = vcmask 1041409   ;;  %s207_s24 = smov [#allocation3]  }
   0x5   :  { %173 = vmatprep.subr.bf16.mxu0 %v204_v3  ;;  %v152_v29 = vld [vmem:[%s268_s2] ss:$0 sm:$0xff]  ;;  %s144_s25 = sshll.u32 %s207_s24, 4  ;;  %vm136_vm4 = vcmask 123904   ;;  %s145_s25 = int_to_ptr.vmem [resolvable:$true] %s144_s25 }
   0x6   :  { %v27_v14 = vadd.f32 %v26_v12, %v25_v9  ;;  %v34_v15 = vadd.f32 %v33_v13, %v32_v10  ;;  %s180_s26 = scalar_lea.vmem %s145_s25, 32  ;;  %p185_p1 = scmp.lt.s32.totalorder %s145_s25, %s145_s25 }
   0x7   :  { %p181_p0 = scmp.ne.s32.totalorder %s145_s25, %s180_s26  ;;  %p186_p2 = scmp.lt.s32.totalorder %s180_s26, %s180_s26 }
   0x8   :  { %175 = vmatpush3.bf16.msra.mxu0 %v174_v11  ;;  %v28_v16 = vrot.slane %v27_v14, 2  ;;  %v35_v17 = vrot.slane %v34_v15, 2  ;;  %v21_v22 = vld [vmem:[#allocation2] sm:$0x3] }
   0x9   :  { %p187_p3 = por %p186_p2, %p185_p1 }
   0xa   :  { %v29_v18 = vadd.f32 %v28_v16, %v27_v14  ;;  %v36_v19 = vadd.f32 %v35_v17, %v34_v15 }
   0xb   :  { %p188_p4 = pnand %p187_p3, %p181_p0 }
   0xc   :  { %v30_v20 = vrot.slane %v29_v18, 1  ;;  %v37_v21 = vrot.slane %v36_v19, 1 }
   0xe   :  { %v31_v23 = vadd.f32 %v30_v20, %v29_v18  ;;  %v38_v24 = vadd.f32 %v37_v21, %v36_v19 }
  0x10   :  { %v42_v25 = vsel %vm41_vm3, %v38_v24, %v31_v23 }
  0x11   :  { %v44_v26 = vadd.f32 %v42_v25, %v21_v22 }
  0x13   :  { %46 = vst.msk [vmem:[#allocation2] sm:$0x3] %vm19_vm0, %v44_v26 }
  0x1a   :  { %v50_v27 = vld [vmem:[#allocation2] sm:$0x3] }
  0x1b   :  { %v51_v28 = vmul.f32 0.125, %v50_v27 }
  0x1d   :  { %168 = vmatmul.mubr.msk.f32.vlgmr.msra.gmra.mrb[0].mxu0 %vm24_vm1, %v51_v28 }
  0xf0   :  { %v132_v30 = vpop.f32.mrb[0].mxu0 }
  0xf1   :  { %v133_v31 = vadd.f32 %v152_v29, %v132_v30  ;;  %v169_v32 = vpop.f32.mrb[1].mxu0 }
  0xf3   :  { %137 = vst.msk [vmem:[#allocation3] sm:$0x3] %vm136_vm4, %v133_v31 }
  0xf4   :  { %191 = shalt.err (!%p188_p4)
}
  0xf5   :  { %s192_s29 = scalar_lea.hbm %s269_s3, 32 }
  0xf6   :  { %p193_p5 = scmp.ne.s32.totalorder %s269_s3, %s192_s29  ;;  %p196_p6 = scmp.lt.u32.totalorder %s192_s29, %s269_s3 }
  0xf8   :  { %p198_p7 = pnand %p196_p6, %p193_p5 }
  0xfa   :  { %201 = shalt.err (!%p198_p7)
}
  0xfb   :  { %147 = dma.vmem_to_hbm [thread:$0]  %s145_s25, 32, %s269_s3, [#allocation4]  }
  0xfc   :  { %202 = dma.done.wait [#allocation4], 32  }
  0xfd   :  { %203 = vsyncadd [#allocation4], 4294967264 }
  0xfe   :  { %151 = vsyncpa [#allocation4], 1 }

</bundles_post_ra>
